<compile_context>
chip_gen: v6e
topology: v6e:2x2x1
jax: 0.10.0
libtpu: 0.0.40
codegen_flags: <defaults>
</compile_context>

<pallas_src>
import functools

import jax
import jax.numpy as jnp
from jax.experimental import pallas as pl
from jax.experimental.pallas import tpu as pltpu

DEFAULT_NEGATIVE_SLOPE = 0.1  # MyLeakyReLU.__init__ default in the spec

_LANE = 128
_TINY_ELEMS = 1024  # below this, let XLA fuse a plain jnp.where instead


def _target_block_bytes() -> int:
    """Generation-aware target block size (per the perf review)."""
    try:
        kind = jax.devices()[0].device_kind.lower()
    except Exception:  # pragma: no cover - defensive; fall back to the safe size
        kind = ""
    if ("v6" in kind) or ("v7" in kind):
        return 4 << 20  # ~4 MiB blocks: 16 MiB live VMEM < 32 MiB scoped default
    return 2 << 20      # v5e & older: 8 MiB live VMEM < 16 MiB scoped default


def _leaky_relu_kernel(x_ref, o_ref, *, negative_slope):
    x = x_ref[...]
    o_ref[...] = jnp.where(x > 0, x, x * negative_slope)


def my_leaky_relu(x: jax.Array, negative_slope: float = DEFAULT_NEGATIVE_SLOPE) -> jax.Array:
    """Elementwise LeakyReLU matching MyLeakyReLU.forward semantics."""
    if negative_slope < 0:
        raise ValueError(
            "negative_slope should be >0, but got {}".format(negative_slope)
        )

    orig_shape = x.shape
    dtype = x.dtype
    n = x.size
    negative_slope = float(negative_slope)

    if n == 0:
        return x
    if n < _TINY_ELEMS:
        # Launch overhead dominates; let XLA fuse this with neighbors.
        return jnp.where(x > 0, x, x * negative_slope)

    itemsize = jnp.dtype(dtype).itemsize
    sublane = max(8, 32 // itemsize)  # 8 for f32, 16 for bf16, 32 for int8/fp8
    target_block_elems = max(sublane * _LANE, _target_block_bytes() // itemsize)

    # Lane-dense column width: widest multiple of 128 that divides n (else pad to 128).
    cols = _LANE
    for c in (4096, 2048, 1024, 512, 256, 128):
        if n % c == 0:
            cols = c
            break

    # Pad only up to a multiple of `cols` (needed for the 2-D reshape); partial
    # trailing *blocks* are handled by Pallas masking, not by extra padding.
    n_pad = pl.cdiv(n, cols) * cols
    x_flat = x.reshape(-1)
    if n_pad != n:
        x_flat = jnp.pad(x_flat, (0, n_pad - n))
    rows = n_pad // cols
    x2d = x_flat.reshape(rows, cols)

    # Block sizing.
    nominal_rows = max(sublane, (target_block_elems // cols) // sublane * sublane)
    if rows <= nominal_rows:
        # Single block covering the whole array (block dims == array dims, so the
        # (8,128) divisibility rule does not apply).
        block_rows = rows
        num_blocks = 1
    else:
        # Balance blocks roughly evenly across the grid (keeps both v7x TCs busy),
        # rounding up to a sublane multiple so the (8,128) rule is satisfied and
        # the trailing partial block (if any) is simply masked by Pallas.
        num_blocks = pl.cdiv(rows, nominal_rows)
        block_rows = min(
            nominal_rows,
            pl.cdiv(pl.cdiv(rows, num_blocks), sublane) * sublane,
        )
        num_blocks = pl.cdiv(rows, block_rows)

    block_bytes = block_rows * cols * itemsize
    # 2 arrays (in + out) x 2 pipeline buffers x block_bytes, plus headroom.
    vmem_limit_bytes = 4 * block_bytes + (4 << 20)

    kernel = functools.partial(_leaky_relu_kernel, negative_slope=negative_slope)

    out2d = pl.pallas_call(
        kernel,
        out_shape=jax.ShapeDtypeStruct((rows, cols), dtype),
        grid=(num_blocks,),
        in_specs=[pl.BlockSpec((block_rows, cols), lambda i: (i, 0))],
        out_specs=pl.BlockSpec((block_rows, cols), lambda i: (i, 0)),
        compiler_params=pltpu.CompilerParams(
            dimension_semantics=("parallel",),
            vmem_limit_bytes=vmem_limit_bytes,
        ),
        cost_estimate=pl.CostEstimate(
            flops=2 * n, transcendentals=0, bytes_accessed=2 * n_pad * itemsize
        ),
    )(x2d)

    out_flat = out2d.reshape(-1)
    if n_pad != n:
        out_flat = out_flat[:n]
    return out_flat.reshape(orig_shape)


def _ref_leaky_relu(x, negative_slope=DEFAULT_NEGATIVE_SLOPE):
    # Pure-JAX reference mirroring the PyTorch forward.
    return jnp.where(x > 0, x, x * jnp.asarray(negative_slope, x.dtype))


if __name__ == "__main__":
    key = jax.random.PRNGKey(0)

    # Small NCHW input consistent with the module (single-block kernel path).
    x = jax.random.normal(key, (2, 4, 16, 16), dtype=jnp.float32)
    y = my_leaky_relu(x)
    jax.block_until_ready(y)
    y_ref = _ref_leaky_relu(x)
    assert y.shape == x.shape and y.dtype == x.dtype
    assert jnp.allclose(y, y_ref, atol=1e-6), "mismatch vs reference (small)"

    # Multi-block path, deliberately NOT a multiple of the block size so the
    # masked partial trailing block is exercised (no block-multiple padding).
    x_big = jax.random.normal(jax.random.PRNGKey(1), (5, 48, 64, 64), dtype=jnp.float32)
    y_big = my_leaky_relu(x_big)
    jax.block_until_ready(y_big)
    assert jnp.allclose(y_big, _ref_leaky_relu(x_big), atol=1e-6), "mismatch (large)"

    print("KERNEL_OK")
</pallas_src>

<mosaic_0001>
module attributes {stable_mosaic.version = 11 : i64} {
  func.func @_leaky_relu_kernel(%arg0: i32, %arg1: memref<1x2048xf32, #tpu.memory_space<vmem>>, %arg2: memref<1x2048xf32, #tpu.memory_space<vmem>>) attributes {dimension_semantics = [#tpu.dimension_semantics<parallel>], iteration_bounds = array<i64: 1>, scalar_prefetch = 0 : i64, scratch_operands = 0 : i64, tpu.core_type = #tpu.core_type<tc>, window_params = [{transform_indices = @transform_0, window_bounds = array<i64: 1, 2048>}, {transform_indices = @transform_1, window_bounds = array<i64: 1, 2048>}]} {
    %c0 = arith.constant 0 : index
    %c0_0 = arith.constant 0 : index
    %0 = vector.load %arg1[%c0, %c0_0] : memref<1x2048xf32, #tpu.memory_space<vmem>>, vector<1x2048xf32>
    %cst = arith.constant 0.000000e+00 : f32
    %1 = vector.broadcast %cst : f32 to vector<1x2048xf32>
    %2 = arith.cmpf ogt, %0, %1 : vector<1x2048xf32>
    %cst_1 = arith.constant 1.000000e-01 : f32
    %3 = vector.broadcast %cst_1 : f32 to vector<1x2048xf32>
    %4 = arith.mulf %0, %3 : vector<1x2048xf32>
    %5 = arith.select %2, %0, %4 : vector<1x2048xi1>, vector<1x2048xf32>
    %c0_2 = arith.constant 0 : index
    %c0_3 = arith.constant 0 : index
    %6 = vector.load %arg2[%c0_2, %c0_3] : memref<1x2048xf32, #tpu.memory_space<vmem>>, vector<1x2048xf32>
    tpu.vector_store %arg2[%c0_2, %c0_3], %5 {strides = array<i32>} : memref<1x2048xf32, #tpu.memory_space<vmem>>, vector<1x2048xf32>,
    return
  }
  func.func @transform_0(%arg0: i32) -> (i32, i32) {
    %c0_i32 = arith.constant 0 : i32
    %c0_i32_0 = arith.constant 0 : i32
    return %arg0, %c0_i32 : i32, i32
  }
  func.func @transform_1(%arg0: i32) -> (i32, i32) {
    %c0_i32 = arith.constant 0 : i32
    %c0_i32_0 = arith.constant 0 : i32
    return %arg0, %c0_i32 : i32, i32
  }
}

</mosaic_0001>

<bundles_post_ra>
// kernel: tpu_custom_call.1
= control target key start
LH: loop header
LB: loop body
LE: loop exit
PB: predicated region body
PF: predicated region fallthrough
CT: control target
= control target key end

     0   :  { %6 = vsyncpa [#allocation3], 0  ;;  %s110_s0 = inlined_call_operand.hbm [shape: f32[1,2048], index: 0, kind: input, shape index: {}]   ;;  %s111_s1 = inlined_call_operand.hbm [shape: f32[1,2048], index: 1, kind: output, shape index: {}]  }
   0x1   :  { %7 = vsyncpa [#allocation4], 0  ;;  %s92_s6 = smov [#allocation2]  }
   0x2   :  { %s14_s7 = sshll.u32 %s92_s6, 4  ;;  %s15_s7 = int_to_ptr.vmem [resolvable:$true] %s14_s7 }
   0x3   :  { %s56_s8 = scalar_lea.vmem %s15_s7, 256  ;;  %p61_p1 = scmp.lt.s32.totalorder %s15_s7, %s15_s7 }
   0x4   :  { %p57_p0 = scmp.ne.s32.totalorder %s15_s7, %s56_s8  ;;  %p62_p2 = scmp.lt.s32.totalorder %s56_s8, %s56_s8 }
   0x6   :  { %p63_p3 = por %p62_p2, %p61_p1 }
   0x8   :  { %p64_p4 = pnand %p63_p3, %p57_p0 }
   0xa   :  { %67 = shalt.err (!%p64_p4)
}
   0xb   :  { %17 = dma.hbm_to_vmem [thread:$0]  %s110_s0, 256, %s15_s7, [#allocation3]  }
   0xc   :  { %88 = dma.done.wait [#allocation3], 256  }
   0xd   :  { %89 = vsyncadd [#allocation3], 4294967040  ;;  %s93_s11 = smov [#allocation5]   ;;  %v21_v0 = vld [vmem:[#allocation2] sm:$0xff]  ;;  %v22_v1 = vld [vmem:[#allocation2 + $0x8] sm:$0xff] }
   0xe   :  { %s37_s12 = sshll.u32 %s93_s11, 4  ;;  %vm23_vm0 = vcmp.gt.f32.partialorder %v21_v0, 0.0  ;;  %v25_v2 = vmul.f32 0.1, %v21_v0  ;;  %vm24_vm1 = vcmp.gt.f32.partialorder %v22_v1, 0.0  ;;  %s38_s12 = int_to_ptr.vmem [resolvable:$true] %s37_s12 }
   0xf   :  { %v26_v3 = vmul.f32 0.1, %v22_v1  ;;  %s68_s13 = scalar_lea.vmem %s38_s12, 256  ;;  %p73_p6 = scmp.lt.s32.totalorder %s38_s12, %s38_s12 }
  0x10   :  { %v27_v4 = vsel %vm23_vm0, %v21_v0, %v25_v2  ;;  %p69_p5 = scmp.ne.s32.totalorder %s38_s12, %s68_s13  ;;  %p74_p7 = scmp.lt.s32.totalorder %s68_s13, %s68_s13 }
  0x11   :  { %v28_v5 = vsel %vm24_vm1, %v22_v1, %v26_v3  ;;  %29 = vst [vmem:[#allocation5] sm:$0xff] %v27_v4 }
  0x12   :  { %30 = vst [vmem:[#allocation5 + $0x8] sm:$0xff] %v28_v5  ;;  %p75_p8 = por %p74_p7, %p73_p6 }
  0x14   :  { %p76_p9 = pnand %p75_p8, %p69_p5 }
  0x16   :  { %79 = shalt.err (!%p76_p9)
}
  0x17   :  { %40 = dma.vmem_to_hbm [thread:$0]  %s38_s12, 256, %s111_s1, [#allocation4]  }
  0x18   :  { %90 = dma.done.wait [#allocation4], 256  }
  0x19   :  { %91 = vsyncadd [#allocation4], 4294967040 }
  0x1a   :  { %44 = vsyncpa [#allocation3], 1 }
  0x1b   :  { %45 = vsyncpa [#allocation4], 1 }

</bundles_post_ra>
